<compile_context>
chip_gen: v7x
topology: tpu7x:2x2x1
jax: 0.10.0
libtpu: 0.0.40
codegen_flags: <defaults>
</compile_context>

<pallas_src>
import functools
import math

import jax
import jax.numpy as jnp
from jax.experimental import pallas as pl
from jax.experimental.pallas import tpu as pltpu

_NEG = -1e30  # "minus infinity" that avoids inf-inf NaN corner cases


def _round_up(x, m):
    return (x + m - 1) // m * m


def _arcface_kernel(emb_ref, emb_inv_ref, labels_ref, wt_ref, w_inv_ref,
                    out_ref, m_ref, l_ref, cos_t_ref,
                    *, margin, scale, num_classes, c_tile, c_padded):
    ci = pl.program_id(1)
    last_ci = pl.num_programs(1) - 1

    # ---- init (once per B tile): zero the online-softmax accumulators ------
    @pl.when(ci == 0)
    def _init():
        m_ref[...] = jnp.full_like(m_ref, _NEG)
        l_ref[...] = jnp.zeros_like(l_ref)
        cos_t_ref[...] = jnp.zeros_like(cos_t_ref)

    # ---- per C-tile work ----------------------------------------------------
    # Raw (TB,E)x(E,TC) dot in the operands' native dtype, f32 accumulation.
    raw = jnp.dot(emb_ref[...], wt_ref[...], preferred_element_type=jnp.float32)
    # Fold both L2 normalizations in as a cheap row-scale x column-scale.
    cosine = raw * emb_inv_ref[...] * w_inv_ref[...]                  # (TB, TC)

    tb, tc = cosine.shape
    col = jax.lax.broadcasted_iota(jnp.int32, (tb, tc), 1)
    target_mask = col == (labels_ref[...] - ci * c_tile)              # (TB, TC)

    # Target-class cosine: exactly one C tile contributes per row.
    cos_t_ref[...] += jnp.sum(jnp.where(target_mask, cosine, 0.0),
                              axis=1, keepdims=True)

    # Online softmax over the NON-target (and non-padding) columns only; the
    # margin-modified target logit is merged at finalize (2-term logsumexp).
    neg = jnp.float32(_NEG)
    s = jnp.where(target_mask, neg, cosine * scale)
    if c_padded != num_classes:   # static: only emit the pad-select if needed
        s = jnp.where(col < (num_classes - ci * c_tile), s, neg)
    m_prev = m_ref[...]
    m_new = jnp.maximum(m_prev, jnp.max(s, axis=1, keepdims=True))
    l_ref[...] = (jnp.exp(m_prev - m_new) * l_ref[...]
                  + jnp.sum(jnp.exp(s - m_new), axis=1, keepdims=True))
    m_ref[...] = m_new

    # ---- finalize (last C tile): margin + cross-entropy ---------------------
    @pl.when(ci == last_ci)
    def _finalize():
        eps = 1e-06
        clamped = jnp.clip(cos_t_ref[...], -1.0 + eps, 1.0 - eps)
        # cos(acos(x) + margin) = x*cos(m) - sqrt(1 - x^2)*sin(m)
        modified = (clamped * math.cos(margin)
                    - jnp.sqrt(1.0 - clamped * clamped) * math.sin(margin))
        t_logit = modified * scale                                    # (TB, 1)
        m = m_ref[...]
        m_f = jnp.maximum(m, t_logit)
        lse = m_f + jnp.log(jnp.exp(m - m_f) * l_ref[...]
                            + jnp.exp(t_logit - m_f))
        per_row_loss = lse - t_logit                                  # (TB, 1)
        out_ref[...] = jnp.broadcast_to(per_row_loss, out_ref.shape)  # lane-dense


def arcface_loss(embeddings, weights, labels, *, margin=0.3, scale=30.0):
    """embeddings: (B, E), weights: (C, E), labels: (B,) int -> scalar f32 loss."""
    B, E = embeddings.shape
    C, E2 = weights.shape
    assert E == E2, "embedding size mismatch"

    emb_itemsize = embeddings.dtype.itemsize
    w_itemsize = weights.dtype.itemsize

    # ---- tile selection ------------------------------------------------------
    # b_tile up to 256 feeds the 256-wide MXU (v6e/v7x) and halves the number
    # of full W passes vs 128.  Sub-128 batches round to the dtype's sublane
    # packing (8 f32 / 16 bf16 / 32 int8).
    sublane = max(8, 32 // emb_itemsize)
    if B >= 256:
        b_tile = 256
    elif B >= 128:
        b_tile = 128
    else:
        b_tile = _round_up(B, sublane)
    # c_tile up to 1024 amortizes the ~0.35us per-grid-step overhead and gives
    # the DMA engine large transfers while still fitting v7x's 64 MiB VMEM.
    c_tile = min(1024, _round_up(C, 128))
    b_pad = _round_up(B, b_tile)
    c_pad = _round_up(C, c_tile)

    # ---- one-time prework (tiny XLA ops) -------------------------------------
    # Per-row / per-class inverse L2 norms in f32 (F.normalize semantics:
    # x / max(||x||, 1e-12)); applied inside the kernel as row/column scales.
    emb_f32 = embeddings.astype(jnp.float32)
    emb_inv = 1.0 / jnp.maximum(
        jnp.sqrt(jnp.sum(emb_f32 * emb_f32, axis=1, keepdims=True)), 1e-12)
    w_f32 = weights.astype(jnp.float32)
    w_inv = 1.0 / jnp.maximum(
        jnp.sqrt(jnp.sum(w_f32 * w_f32, axis=1)), 1e-12)

    emb_p = jnp.pad(embeddings, ((0, b_pad - B), (0, 0)))
    emb_inv_p = jnp.pad(emb_inv, ((0, b_pad - B), (0, 0)))
    labels_p = jnp.pad(labels.astype(jnp.int32), (0, b_pad - B)).reshape(b_pad, 1)
    # Pre-transpose W so the kernel runs a plain (TB,E)x(E,TC) matmul with no
    # per-tile XLU transpose; W streams in its native dtype.
    wt_p = jnp.pad(weights.T, ((0, 0), (0, c_pad - C)))
    w_inv_p = jnp.pad(w_inv, (0, c_pad - C)).reshape(1, c_pad)

    kernel = functools.partial(
        _arcface_kernel, margin=margin, scale=scale,
        num_classes=C, c_tile=c_tile, c_padded=c_pad)

    # ---- VMEM budget & cost estimate -----------------------------------------
    vmem_needed = (2 * b_tile * E * emb_itemsize        # emb (double-buffered)
                   + 2 * E * c_tile * w_itemsize        # W^T (double-buffered)
                   + 2 * c_tile * 4 + 4 * b_tile * 4    # inv-norms + labels
                   + 2 * b_tile * 128 * 4               # output
                   + 3 * b_tile * 4                     # scratch accumulators
                   + 6 * b_tile * c_tile * 4)           # (TB,TC) intermediates
    vmem_limit = int(min(48 * 1024 * 1024,
                         max(32 * 1024 * 1024, 2 * vmem_needed)))

    num_b_tiles = b_pad // b_tile
    cost = pl.CostEstimate(
        flops=2 * b_pad * c_pad * E,
        transcendentals=b_pad * c_pad + 4 * b_pad,
        bytes_accessed=(b_pad * E * emb_itemsize
                        + num_b_tiles * c_pad * (E * w_itemsize + 4)  # W re-reads
                        + b_pad * (4 + 4)
                        + b_pad * 128 * 4))

    grid_spec = pltpu.PrefetchScalarGridSpec(
        num_scalar_prefetch=0,
        grid=(num_b_tiles, c_pad // c_tile),
        in_specs=[
            pl.BlockSpec((b_tile, E), lambda bi, ci: (bi, 0)),   # embeddings
            pl.BlockSpec((b_tile, 1), lambda bi, ci: (bi, 0)),   # 1/||emb||
            pl.BlockSpec((b_tile, 1), lambda bi, ci: (bi, 0)),   # labels
            # TODO(synk): add pipeline_mode=pl.Buffered(3) to the W^T spec if
            # profiling still shows exposed W DMA after the tile enlargement.
            pl.BlockSpec((E, c_tile), lambda bi, ci: (0, ci)),   # W^T (streamed)
            pl.BlockSpec((1, c_tile), lambda bi, ci: (0, ci)),   # 1/||W_c||
        ],
        out_specs=pl.BlockSpec((b_tile, 128), lambda bi, ci: (bi, 0)),
        scratch_shapes=[
            pltpu.VMEM((b_tile, 1), jnp.float32),   # running max (non-target)
            pltpu.VMEM((b_tile, 1), jnp.float32),   # running sum-exp
            pltpu.VMEM((b_tile, 1), jnp.float32),   # target-class cosine
        ],
    )

    per_row = pl.pallas_call(
        kernel,
        out_shape=jax.ShapeDtypeStruct((b_pad, 128), jnp.float32),
        grid_spec=grid_spec,
        compiler_params=pltpu.CompilerParams(
            dimension_semantics=("parallel", "arbitrary"),
            vmem_limit_bytes=vmem_limit),
        cost_estimate=cost,
    )(emb_p, emb_inv_p, labels_p, wt_p, w_inv_p)

    # Tiny final reduction (mean over real rows) stays in the XLA wrapper.
    return jnp.mean(per_row[:B, 0])


if __name__ == "__main__":
    num_classes = 16
    embedding_size = 32
    batch = 8
    margin = 0.3
    scale = 30.0

    key = jax.random.PRNGKey(0)
    k_emb, k_w, k_lab = jax.random.split(key, 3)

    # Deterministic xavier_normal_-style init for W.
    xavier_std = math.sqrt(2.0 / (num_classes + embedding_size))
    W = jax.random.normal(k_w, (num_classes, embedding_size), jnp.float32) * xavier_std
    embeddings = jax.random.normal(k_emb, (batch, embedding_size), jnp.float32)
    labels = jax.random.randint(k_lab, (batch,), 0, num_classes, jnp.int32)

    loss = arcface_loss(embeddings, W, labels, margin=margin, scale=scale)
    jax.block_until_ready(loss)

    # Pure-JAX reference of the same forward math (ArcFaceLoss3.forward).
    def ref(emb, w, lab):
        emb_n = emb / jnp.maximum(jnp.linalg.norm(emb, axis=1, keepdims=True), 1e-12)
        w_n = w / jnp.maximum(jnp.linalg.norm(w, axis=1, keepdims=True), 1e-12)
        cosine = jnp.matmul(emb_n, w_n.T, precision=jax.lax.Precision.HIGHEST)
        mask = jax.nn.one_hot(lab, num_classes, dtype=jnp.float32)
        cos_t = jnp.sum(cosine * mask, axis=1, keepdims=True)
        clamped = jnp.clip(cos_t, -1 + 1e-6, 1 - 1e-6)
        modified = jnp.cos(jnp.arccos(clamped) + margin)
        logits = (cosine + mask * (modified - cos_t)) * scale
        logp = jax.nn.log_softmax(logits, axis=1)
        return -jnp.mean(jnp.sum(logp * mask, axis=1))

    ref_loss = ref(embeddings, W, labels)
    # Tolerance covers possible reduced-precision MXU passes at scale=30.
    assert jnp.allclose(loss, ref_loss, rtol=2e-2, atol=5e-2), (loss, ref_loss)

    print("KERNEL_OK")
</pallas_src>

<mosaic_0001>
module attributes {stable_mosaic.version = 11 : i64} {
  func.func @_arcface_kernel(%arg0: i32, %arg1: i32, %arg2: memref<8x32xf32, #tpu.memory_space<vmem>>, %arg3: memref<8x1xf32, #tpu.memory_space<vmem>>, %arg4: memref<8x1xi32, #tpu.memory_space<vmem>>, %arg5: memref<32x128xf32, #tpu.memory_space<vmem>>, %arg6: memref<1x128xf32, #tpu.memory_space<vmem>>, %arg7: memref<8x128xf32, #tpu.memory_space<vmem>>, %arg8: memref<8x1xf32, #tpu.memory_space<vmem>>, %arg9: memref<8x1xf32, #tpu.memory_space<vmem>>, %arg10: memref<8x1xf32, #tpu.memory_space<vmem>>) attributes {dimension_semantics = [#tpu.dimension_semantics<parallel>, #tpu.dimension_semantics<arbitrary>], iteration_bounds = array<i64: 1, 1>, scalar_prefetch = 0 : i64, scratch_operands = 3 : i64, tpu.core_type = #tpu.core_type<tc>, window_params = [{transform_indices = @transform_0, window_bounds = array<i64: 8, 32>}, {transform_indices = @transform_1, window_bounds = array<i64: 8, 1>}, {transform_indices = @transform_2, window_bounds = array<i64: 8, 1>}, {transform_indices = @transform_3, window_bounds = array<i64: 32, 128>}, {transform_indices = @transform_4, window_bounds = array<i64: 1, 128>}, {transform_indices = @transform_5, window_bounds = array<i64: 8, 128>}]} {
    %c0_i32 = arith.constant 0 : i32
    %0 = arith.cmpi eq, %arg1, %c0_i32 : i32
    %1 = arith.extui %0 : i1 to i32
    %c0_i32_0 = arith.constant 0 : i32
    %2 = arith.cmpi ne, %1, %c0_i32_0 : i32
    scf.if %2 {
      %cst_32 = arith.constant -1.000000e+30 : f32
      %55 = vector.broadcast %cst_32 : f32 to vector<8x1xf32>
      %c0_33 = arith.constant 0 : index
      %c0_34 = arith.constant 0 : index
      %56 = vector.load %arg8[%c0_33, %c0_34] : memref<8x1xf32, #tpu.memory_space<vmem>>, vector<8x1xf32>
      tpu.vector_store %arg8[%c0_33, %c0_34], %55 {strides = array<i32>} : memref<8x1xf32, #tpu.memory_space<vmem>>, vector<8x1xf32>,
      %cst_35 = arith.constant 0.000000e+00 : f32
      %57 = vector.broadcast %cst_35 : f32 to vector<8x1xf32>
      %c0_36 = arith.constant 0 : index
      %c0_37 = arith.constant 0 : index
      %58 = vector.load %arg9[%c0_36, %c0_37] : memref<8x1xf32, #tpu.memory_space<vmem>>, vector<8x1xf32>
      tpu.vector_store %arg9[%c0_36, %c0_37], %57 {strides = array<i32>} : memref<8x1xf32, #tpu.memory_space<vmem>>, vector<8x1xf32>,
      %cst_38 = arith.constant 0.000000e+00 : f32
      %59 = vector.broadcast %cst_38 : f32 to vector<8x1xf32>
      %c0_39 = arith.constant 0 : index
      %c0_40 = arith.constant 0 : index
      %60 = vector.load %arg10[%c0_39, %c0_40] : memref<8x1xf32, #tpu.memory_space<vmem>>, vector<8x1xf32>
      tpu.vector_store %arg10[%c0_39, %c0_40], %59 {strides = array<i32>} : memref<8x1xf32, #tpu.memory_space<vmem>>, vector<8x1xf32>,
    } else {
    }
    %c0 = arith.constant 0 : index
    %c0_1 = arith.constant 0 : index
    %3 = vector.load %arg2[%c0, %c0_1] : memref<8x32xf32, #tpu.memory_space<vmem>>, vector<8x32xf32>
    %c0_2 = arith.constant 0 : index
    %c0_3 = arith.constant 0 : index
    %4 = vector.load %arg5[%c0_2, %c0_3] : memref<32x128xf32, #tpu.memory_space<vmem>>, vector<32x128xf32>
    %cst = arith.constant dense<0.000000e+00> : vector<8x128xf32>
    %5 = tpu.matmul %3, %4, %cst {dimension_numbers = #tpu.dot_dimension_numbers<[1], [0], [0], [1], [0, 0, 1, 1], [], []>} : vector<8x32xf32>, vector<32x128xf32>, vector<8x128xf32> -> vector<8x128xf32>
    %c0_4 = arith.constant 0 : index
    %c0_5 = arith.constant 0 : index
    %6 = vector.load %arg3[%c0_4, %c0_5] : memref<8x1xf32, #tpu.memory_space<vmem>>, vector<8x1xf32>
    %7 = vector.broadcast %6 : vector<8x1xf32> to vector<8x128xf32>
    %8 = arith.mulf %5, %7 : vector<8x128xf32>
    %c0_6 = arith.constant 0 : index
    %c0_7 = arith.constant 0 : index
    %9 = vector.load %arg6[%c0_6, %c0_7] : memref<1x128xf32, #tpu.memory_space<vmem>>, vector<1x128xf32>
    %10 = vector.broadcast %9 : vector<1x128xf32> to vector<8x128xf32>
    %11 = arith.mulf %8, %10 : vector<8x128xf32>
    %12 = tpu.iota {dimensions = array<i32: 1>} : vector<8x128xi32>
    %c0_8 = arith.constant 0 : index
    %c0_9 = arith.constant 0 : index
    %13 = vector.load %arg4[%c0_8, %c0_9] : memref<8x1xi32, #tpu.memory_space<vmem>>, vector<8x1xi32>
    %c128_i32 = arith.constant 128 : i32
    %14 = arith.muli %arg1, %c128_i32 : i32
    %15 = vector.broadcast %14 : i32 to vector<8x1xi32>
    %16 = arith.subi %13, %15 : vector<8x1xi32>
    %17 = vector.broadcast %16 : vector<8x1xi32> to vector<8x128xi32>
    %18 = arith.cmpi eq, %12, %17 : vector<8x128xi32>
    %c0_10 = arith.constant 0 : index
    %c0_11 = arith.constant 0 : index
    %19 = vector.load %arg10[%c0_10, %c0_11] : memref<8x1xf32, #tpu.memory_space<vmem>>, vector<8x1xf32>
    %cst_12 = arith.constant 0.000000e+00 : f32
    %20 = vector.broadcast %cst_12 : f32 to vector<8x128xf32>
    %21 = arith.select %18, %11, %20 : vector<8x128xi1>, vector<8x128xf32>
    %cst_13 = arith.constant dense<0.000000e+00> : vector<8xf32>
    %22 = vector.multi_reduction <add>, %21, %cst_13 [1] : vector<8x128xf32> to vector<8xf32>
    %23 = vector.shape_cast %22 : vector<8xf32> to vector<8x1xf32>
    %24 = arith.addf %19, %23 : vector<8x1xf32>
    %c0_14 = arith.constant 0 : index
    %c0_15 = arith.constant 0 : index
    %25 = vector.load %arg10[%c0_14, %c0_15] : memref<8x1xf32, #tpu.memory_space<vmem>>, vector<8x1xf32>
    tpu.vector_store %arg10[%c0_14, %c0_15], %24 {strides = array<i32>} : memref<8x1xf32, #tpu.memory_space<vmem>>, vector<8x1xf32>,
    %cst_16 = arith.constant 3.000000e+01 : f32
    %26 = vector.broadcast %cst_16 : f32 to vector<8x128xf32>
    %27 = arith.mulf %11, %26 : vector<8x128xf32>
    %cst_17 = arith.constant -1.000000e+30 : f32
    %28 = vector.broadcast %cst_17 : f32 to vector<8x128xf32>
    %29 = arith.select %18, %28, %27 : vector<8x128xi1>, vector<8x128xf32>
    %c128_i32_18 = arith.constant 128 : i32
    %30 = arith.muli %arg1, %c128_i32_18 : i32
    %c16_i32 = arith.constant 16 : i32
    %31 = arith.subi %c16_i32, %30 : i32
    %32 = vector.broadcast %31 : i32 to vector<8x128xi32>
    %33 = arith.cmpi slt, %12, %32 : vector<8x128xi32>
    %cst_19 = arith.constant -1.000000e+30 : f32
    %34 = vector.broadcast %cst_19 : f32 to vector<8x128xf32>
    %35 = arith.select %33, %29, %34 : vector<8x128xi1>, vector<8x128xf32>
    %c0_20 = arith.constant 0 : index
    %c0_21 = arith.constant 0 : index
    %36 = vector.load %arg8[%c0_20, %c0_21] : memref<8x1xf32, #tpu.memory_space<vmem>>, vector<8x1xf32>
    %cst_22 = arith.constant dense<0xFF800000> : vector<8xf32>
    %37 = vector.multi_reduction <maximumf>, %35, %cst_22 [1] : vector<8x128xf32> to vector<8xf32>
    %38 = vector.shape_cast %37 : vector<8xf32> to vector<8x1xf32>
    %39 = arith.maximumf %36, %38 : vector<8x1xf32>
    %40 = arith.subf %36, %39 : vector<8x1xf32>
    %41 = math.exp %40 : vector<8x1xf32>
    %c0_23 = arith.constant 0 : index
    %c0_24 = arith.constant 0 : index
    %42 = vector.load %arg9[%c0_23, %c0_24] : memref<8x1xf32, #tpu.memory_space<vmem>>, vector<8x1xf32>
    %43 = arith.mulf %41, %42 : vector<8x1xf32>
    %44 = vector.broadcast %39 : vector<8x1xf32> to vector<8x128xf32>
    %45 = arith.subf %35, %44 : vector<8x128xf32>
    %46 = math.exp %45 : vector<8x128xf32>
    %cst_25 = arith.constant dense<0.000000e+00> : vector<8xf32>
    %47 = vector.multi_reduction <add>, %46, %cst_25 [1] : vector<8x128xf32> to vector<8xf32>
    %48 = vector.shape_cast %47 : vector<8xf32> to vector<8x1xf32>
    %49 = arith.addf %43, %48 : vector<8x1xf32>
    %c0_26 = arith.constant 0 : index
    %c0_27 = arith.constant 0 : index
    %50 = vector.load %arg9[%c0_26, %c0_27] : memref<8x1xf32, #tpu.memory_space<vmem>>, vector<8x1xf32>
    tpu.vector_store %arg9[%c0_26, %c0_27], %49 {strides = array<i32>} : memref<8x1xf32, #tpu.memory_space<vmem>>, vector<8x1xf32>,
    %c0_28 = arith.constant 0 : index
    %c0_29 = arith.constant 0 : index
    %51 = vector.load %arg8[%c0_28, %c0_29] : memref<8x1xf32, #tpu.memory_space<vmem>>, vector<8x1xf32>
    tpu.vector_store %arg8[%c0_28, %c0_29], %39 {strides = array<i32>} : memref<8x1xf32, #tpu.memory_space<vmem>>, vector<8x1xf32>,
    %c0_i32_30 = arith.constant 0 : i32
    %52 = arith.cmpi eq, %arg1, %c0_i32_30 : i32
    %53 = arith.extui %52 : i1 to i32
    %c0_i32_31 = arith.constant 0 : i32
    %54 = arith.cmpi ne, %53, %c0_i32_31 : i32
    scf.if %54 {
      %c0_32 = arith.constant 0 : index
      %c0_33 = arith.constant 0 : index
      %55 = vector.load %arg10[%c0_32, %c0_33] : memref<8x1xf32, #tpu.memory_space<vmem>>, vector<8x1xf32>
      %cst_34 = arith.constant -0.999998986 : f32
      %cst_35 = arith.constant 0.999998986 : f32
      %56 = vector.broadcast %cst_34 : f32 to vector<8x1xf32>
      %57 = arith.maximumf %56, %55 : vector<8x1xf32>
      %58 = vector.broadcast %cst_35 : f32 to vector<8x1xf32>
      %59 = arith.minimumf %58, %57 : vector<8x1xf32>
      %cst_36 = arith.constant 0.955336511 : f32
      %60 = vector.broadcast %cst_36 : f32 to vector<8x1xf32>
      %61 = arith.mulf %59, %60 : vector<8x1xf32>
      %62 = arith.mulf %59, %59 : vector<8x1xf32>
      %cst_37 = arith.constant 1.000000e+00 : f32
      %63 = vector.broadcast %cst_37 : f32 to vector<8x1xf32>
      %64 = arith.subf %63, %62 : vector<8x1xf32>
      %65 = math.sqrt %64 : vector<8x1xf32>
      %cst_38 = arith.constant 0.295520216 : f32
      %66 = vector.broadcast %cst_38 : f32 to vector<8x1xf32>
      %67 = arith.mulf %65, %66 : vector<8x1xf32>
      %68 = arith.subf %61, %67 : vector<8x1xf32>
      %cst_39 = arith.constant 3.000000e+01 : f32
      %69 = vector.broadcast %cst_39 : f32 to vector<8x1xf32>
      %70 = arith.mulf %68, %69 : vector<8x1xf32>
      %c0_40 = arith.constant 0 : index
      %c0_41 = arith.constant 0 : index
      %71 = vector.load %arg8[%c0_40, %c0_41] : memref<8x1xf32, #tpu.memory_space<vmem>>, vector<8x1xf32>
      %72 = arith.maximumf %71, %70 : vector<8x1xf32>
      %73 = arith.subf %71, %72 : vector<8x1xf32>
      %74 = math.exp %73 : vector<8x1xf32>
      %c0_42 = arith.constant 0 : index
      %c0_43 = arith.constant 0 : index
      %75 = vector.load %arg9[%c0_42, %c0_43] : memref<8x1xf32, #tpu.memory_space<vmem>>, vector<8x1xf32>
      %76 = arith.mulf %74, %75 : vector<8x1xf32>
      %77 = arith.subf %70, %72 : vector<8x1xf32>
      %78 = math.exp %77 : vector<8x1xf32>
      %79 = arith.addf %76, %78 : vector<8x1xf32>
      %80 = math.log %79 : vector<8x1xf32>
      %81 = arith.addf %72, %80 : vector<8x1xf32>
      %82 = arith.subf %81, %70 : vector<8x1xf32>
      %83 = vector.shape_cast %82 : vector<8x1xf32> to vector<8x1xf32>
      %84 = vector.broadcast %83 : vector<8x1xf32> to vector<8x128xf32>
      %c0_44 = arith.constant 0 : index
      %c0_45 = arith.constant 0 : index
      %85 = vector.load %arg7[%c0_44, %c0_45] : memref<8x128xf32, #tpu.memory_space<vmem>>, vector<8x128xf32>
      tpu.vector_store %arg7[%c0_44, %c0_45], %84 {strides = array<i32>} : memref<8x128xf32, #tpu.memory_space<vmem>>, vector<8x128xf32>,
    } else {
    }
    return
  }
  func.func @transform_0(%arg0: i32, %arg1: i32) -> (i32, i32) {
    %c0_i32 = arith.constant 0 : i32
    %c0_i32_0 = arith.constant 0 : i32
    return %arg0, %c0_i32 : i32, i32
  }
  func.func @transform_1(%arg0: i32, %arg1: i32) -> (i32, i32) {
    %c0_i32 = arith.constant 0 : i32
    %c0_i32_0 = arith.constant 0 : i32
    return %arg0, %c0_i32 : i32, i32
  }
  func.func @transform_2(%arg0: i32, %arg1: i32) -> (i32, i32) {
    %c0_i32 = arith.constant 0 : i32
    %c0_i32_0 = arith.constant 0 : i32
    return %arg0, %c0_i32 : i32, i32
  }
  func.func @transform_3(%arg0: i32, %arg1: i32) -> (i32, i32) {
    %c0_i32 = arith.constant 0 : i32
    %c0_i32_0 = arith.constant 0 : i32
    return %c0_i32, %arg1 : i32, i32
  }
  func.func @transform_4(%arg0: i32, %arg1: i32) -> (i32, i32) {
    %c0_i32 = arith.constant 0 : i32
    %c0_i32_0 = arith.constant 0 : i32
    return %c0_i32, %arg1 : i32, i32
  }
  func.func @transform_5(%arg0: i32, %arg1: i32) -> (i32, i32) {
    %c0_i32 = arith.constant 0 : i32
    %c0_i32_0 = arith.constant 0 : i32
    return %arg0, %c0_i32 : i32, i32
  }
}

</mosaic_0001>

<bundles_post_ra>
// kernel: tpu_custom_call.1
= control target key start
LH: loop header
LB: loop body
LE: loop exit
PB: predicated region body
PF: predicated region fallthrough
CT: control target
= control target key end

     0   :  { %10 = vsyncpa [#allocation6], 0  ;;  %s414_s0 = inlined_call_operand.vmem [shape: f32[8,32], index: 0, kind: input, shape index: {}]   ;;  %s415_s1 = inlined_call_operand.vmem [shape: f32[8,1], index: 1, kind: input, shape index: {}]   ;;  %s416_s2 = inlined_call_operand.vmem [shape: s32[8,1], index: 2, kind: input, shape index: {}]   ;;  %s417_s3 = inlined_call_operand.hbm [shape: f32[32,128], index: 3, kind: input, shape index: {}]   ;;  %s418_s4 = inlined_call_operand.vmem [shape: f32[1,128], index: 4, kind: input, shape index: {}]   ;;  %s419_s5 = inlined_call_operand.hbm [shape: f32[8,128], index: 5, kind: output, shape index: {}]  }
   0x1   :  { %11 = vsyncpa [#allocation7], 0  ;;  %s333_s18 = smov [#allocation5]   ;;  %s285_s22 = scalar_lea.hbm %s417_s3, 512 }
   0x2   :  { %s23_s19 = sshll.u32 %s333_s18, 4  ;;  %p286_p0 = scmp.ne.s32.totalorder %s417_s3, %s285_s22  ;;  %s24_s19 = int_to_ptr.vmem [resolvable:$true] %s23_s19 }
   0x3   :  { %p289_p1 = scmp.lt.u32.totalorder %s285_s22, %s417_s3 }
   0x5   :  { %p291_p2 = pnand %p289_p1, %p286_p0 }
   0x7   :  { %294 = shalt.err (!%p291_p2)
}
   0x8   :  { %s295_s27 = scalar_lea.vmem %s24_s19, 512  ;;  %p300_p4 = scmp.lt.s32.totalorder %s24_s19, %s24_s19 }
   0x9   :  { %p296_p3 = scmp.ne.s32.totalorder %s24_s19, %s295_s27  ;;  %p301_p5 = scmp.lt.s32.totalorder %s295_s27, %s295_s27 }
   0xb   :  { %p302_p6 = por %p301_p5, %p300_p4 }
   0xd   :  { %p303_p7 = pnand %p302_p6, %p296_p3 }
   0xf   :  { %306 = shalt.err (!%p303_p7)
}
  0x10   :  { %s334_s28 = smov 128   ;;  %s335_s29 = smov 8  }
  0x11   :  { %29 = dma.hbm_to_vmem [thread:$0]  %s417_s3, 512, %s24_s19, [#allocation6], %s334_s28, %s334_s28, %s335_s29  }
  0x12   :  { %329 = dma.done.wait [#allocation6], 512  }
  0x13   :  { %330 = vsyncadd [#allocation6], 4294966784  ;;  %vm39_vm0 = vcmask 7168   ;;  %v336_v0 = vmov 0.0|0.0   ;;  %v337_v1 = vmov 0.0   ;;  %vm338_vm1 = vmmov 0  }
  0x14   :  { %256 = vmatprep.subr.bf16.mxu0 %v336_v0  ;;  %41 = vst.msk [vmem:[#allocation3] sm:$0xff] %vm39_vm0, %v337_v1  ;;  %42 = vst.msk [vmem:[#allocation4] sm:$0xff] %vm39_vm0, %v337_v1  ;;  %253 = vmatprep.mubr.msk.f32.mxu0 %vm338_vm1, %v337_v1  ;;  %v339_v2 = vmov 0   ;;  %v44_v3 = vld [vmem:[#allocation5] sm:$0xff]  ;;  %v45_v4 = vld [vmem:[#allocation5 + $0x8] sm:$0xff]  ;;  %vm48_vm2 = vcmask 261120   ;;  %v137_v13 = vlaneseq }
  0x15   :  { %271 = vset.pattern.permute.xlu0 %v339_v2  ;;  %272 = vset.pattern.permute.xlu1 %v339_v2  ;;  %v46_v5 = vld [vmem:[#allocation5 + $0x10] sm:$0xff]  ;;  %v257_v6 = vpack.c.bf16 %v45_v4, %v44_v3  ;;  %v47_v7 = vld [vmem:[#allocation5 + $0x18] sm:$0xff]  ;;  %v122_v8 = vld [vmem:[%s415_s1] sm:$0xff]  ;;  %v340_v25 = vmov -1e+30  }
  0x16   :  { %125 = vperm.xlu0 %271, %v122_v8   ;;  %v260_v9 = vpack.c.bf16 %v47_v7, %v46_v5  ;;  %v139_v10 = vld [vmem:[%s416_s2] sm:$0xff]  ;;  %v138_v14 = vand.u32 127, %v137_v13  ;;  %40 = vst.msk [vmem:[#allocation2] sm:$0xff] %vm39_vm0, %v340_v25 }
  0x17   :  { %258 = vmatpush3.bf16.msra.mxu0 %v257_v6  ;;  %v43_v11 = vld [vmem:[%s414_s0] sm:$0xff]  ;;  %s341_s0 = smov [#allocation8]  }
  0x18   :  { %259 = vmatprep.subr.bf16.mxu0 %v336_v0  ;;  %v238_v16 = vld [vmem:[%s418_s4] ss:$0 sm:$0xff]  ;;  %vm158_vm4 = vcmp.lt.s32.totalorder %v138_v14, 16  ;;  %s228_s2 = sshll.u32 %s341_s0, 4  ;;  %s229_s2 = int_to_ptr.vmem [resolvable:$true] %s228_s2 }
  0x19   :  { %s307_s4 = scalar_lea.vmem %s229_s2, 128  ;;  %p312_p9 = scmp.lt.s32.totalorder %s229_s2, %s229_s2 }
  0x1a   :  { %144 = vperm.xlu0 %271, %v139_v10   ;;  %p308_p8 = scmp.ne.s32.totalorder %s229_s2, %s307_s4  ;;  %p313_p10 = scmp.lt.s32.totalorder %s307_s4, %s307_s4 }
  0x1b   :  { %261 = vmatpush3.bf16.msra.mxu0 %v260_v9  ;;  %v147_v26 = vld [vmem:[#allocation4] sm:$0xff]  ;;  %v167_v56 = vld [vmem:[#allocation3] sm:$0xff] }
  0x1c   :  { %p314_p11 = por %p313_p10, %p312_p9 }
  0x1d   :  { %v160_v29 = vld [vmem:[#allocation2] sm:$0xff] }
  0x1e   :  { %254 = vmatmul.mubr.msk.f32.vlgmr.msra.gmra.mrb[0].mxu0 %vm48_vm2, %v43_v11  ;;  %p315_p12 = pnand %p314_p11, %p308_p8 }
  0x95   :  { %v126_v12 = vpop.permute.xlu0 %125 }
  0x99   :  { %v145_v17 = vpop.permute.xlu0 %144 }
  0x9a   :  { %vm146_vm3 = vcmp.eq.s32.totalorder %v138_v14, %v145_v17 }
  0xf1   :  { %v118_v15 = vpop.f32.mrb[0].mxu0 }
  0xf2   :  { %v128_v18 = vmul.f32 %v126_v12, %v118_v15  ;;  %v255_v19 = vpop.f32.mrb[1].mxu0 }
  0xf4   :  { %v136_v20 = vmul.f32 %v238_v16, %v128_v18 }
  0xf6   :  { %v148_v21 = vsel %vm146_vm3, %v136_v20, 0.0  ;;  %v154_v22 = vmul.f32 30.0, %v136_v20 }
  0xf7   :  { %149 = vadd.xlane.f32.xlu0 %v148_v21 }
  0xf8   :  { %v155_v23 = vsel %vm146_vm3, -1e+30, %v154_v22 }
  0xf9   :  { %v159_v24 = vsel %vm158_vm4, %v155_v23, -1e+30 }
  0xfa   :  { %161 = vmax.xlane.f32.xlu1 %v159_v24 }
 0x184   :  { %v150_v27 = vpop.xlane.xlu0 %149 }
 0x185   :  { %v151_v28 = vadd.f32 %v150_v27, %v147_v26 }
 0x187   :  { %153 = vst.msk [vmem:[#allocation4] sm:$0xff] %vm39_vm0, %v151_v28  ;;  %v162_v30 = vpop.xlane.xlu1 %161 }
 0x188   :  { %v163_v31 = vmax.f32 %v160_v29, %v162_v30 }
 0x18a   :  { %v164_v32 = vsub.f32 %v160_v29, %v163_v31  ;;  %181 = vst.msk [vmem:[#allocation2] sm:$0xff] %vm39_vm0, %v163_v31  ;;  %171 = vperm.xlu1 %272, %v163_v31  }
 0x18c   :  { %v165_v49 = vmul.f32 1.442695, %v164_v32 }
 0x18e   :  { %v185_v37 = vld [vmem:[#allocation4] sm:$0xff] }
 0x18f   :  { %v239_v38 = vclamps-f32 %v185_v37, 0.999999 }
 0x191   :  { %v189_v39 = vmul.f32 %v239_v38, %v239_v38  ;;  %v188_v47 = vmul.f32 0.9553365, %v239_v38  ;;  %v201_v51 = vld [vmem:[#allocation2] sm:$0xff] }
 0x193   :  { %v190_v40 = vsub.f32 1.0, %v189_v39 }
 0x195   :  { %vm193_vm5 = vcmp.eq.f32.partialorder %v190_v40, inf  ;;  %v196_v44 = vand.u32 2147483648, %v190_v40  ;;  %vm195_vm6 = vcmp.eq.f32.partialorder %v190_v40, 0.0 }
 0x209   :  { %v172_v33 = vpop.permute.xlu1 %171 }
 0x20a   :  { %v174_v34 = vsub.f32 %v159_v24, %v172_v33 }
 0x20c   :  { %v175_v35 = vmul.f32 1.442695, %v174_v34 }
 0x20e   :  { %273 = vpow2.f32 %v175_v35 }
 0x20f   :  { %275 = vrsqrt.f32 %v190_v40 }
 0x210   :  { %277 = vpow2.f32 %v165_v49 }
 0x218   :  { %v274_v36 = vpop.eup %273 }
 0x219   :  { %177 = vadd.xlane.f32.xlu1 %v274_v36  ;;  %v276_v41 = vpop.eup %275 }
 0x21a   :  { %v192_v42 = vmul.f32 %v276_v41, %v190_v40  ;;  %v278_v55 = vpop.eup %277 }
 0x21b   :  { %v168_v59 = vmul.f32 %v278_v55, %v167_v56 }
 0x21c   :  { %v194_v43 = vsel %vm193_vm5, %v190_v40, %v192_v42 }
 0x21d   :  { %v197_v45 = vsel %vm195_vm6, %v196_v44, %v194_v43 }
 0x21e   :  { %v198_v46 = vmul.f32 0.29552022, %v197_v45 }
 0x220   :  { %v199_v48 = vsub.f32 %v188_v47, %v198_v46 }
 0x222   :  { %v200_v50 = vmul.f32 30.0, %v199_v48 }
 0x224   :  { %v202_v52 = vmax.f32 %v201_v51, %v200_v50 }
 0x226   :  { %v203_v53 = vsub.f32 %v201_v51, %v202_v52  ;;  %v208_v54 = vsub.f32 %v200_v50, %v202_v52 }
 0x228   :  { %v204_v57 = vmul.f32 1.442695, %v203_v53  ;;  %v209_v58 = vmul.f32 1.442695, %v208_v54 }
 0x22a   :  { %279 = vpow2.f32 %v204_v57 }
 0x22b   :  { %281 = vpow2.f32 %v209_v58 }
 0x234   :  { %v280_v62 = vpop.eup %279 }
 0x235   :  { %v282_v1 = vpop.eup %281 }
 0x2a6   :  { %v178_v60 = vpop.xlane.xlu1 %177 }
 0x2a7   :  { %v179_v61 = vadd.f32 %v178_v60, %v168_v59 }
 0x2a9   :  { %180 = vst.msk [vmem:[#allocation3] sm:$0xff] %vm39_vm0, %v179_v61 }
 0x2b0   :  { %v206_v63 = vld [vmem:[#allocation3] sm:$0xff] }
 0x2b1   :  { %v207_v0 = vmul.f32 %v280_v62, %v206_v63 }
 0x2b3   :  { %v211_v2 = vadd.f32 %v282_v1, %v207_v0 }
 0x2b5   :  { %283 = vlog2.f32 %v211_v2 }
 0x2bf   :  { %v284_v3 = vpop.eup %283 }
 0x2c0   :  { %v213_v4 = vmul.f32 0.6931472, %v284_v3 }
 0x2c2   :  { %v214_v5 = vadd.f32 %v213_v4, %v202_v52 }
 0x2c4   :  { %v215_v6 = vsub.f32 %v214_v5, %v200_v50 }
 0x2c6   :  { %218 = vperm.xlu0 %271, %v215_v6  }
 0x345   :  { %v219_v7 = vpop.permute.xlu0 %218 }
 0x346   :  { %221 = vst [vmem:[#allocation8] sm:$0xff] %v219_v7 }
 0x347   :  { %318 = shalt.err (!%p315_p12)
}
 0x348   :  { %s319_s15 = scalar_lea.hbm %s419_s5, 128 }
 0x349   :  { %p320_p13 = scmp.ne.s32.totalorder %s419_s5, %s319_s15  ;;  %p323_p0 = scmp.lt.u32.totalorder %s319_s15, %s419_s5 }
 0x34b   :  { %p325_p1 = pnand %p323_p0, %p320_p13 }
 0x34d   :  { %328 = shalt.err (!%p325_p1)
}
 0x34e   :  { %231 = dma.vmem_to_hbm [thread:$0]  %s229_s2, 128, %s419_s5, [#allocation7]  }
 0x34f   :  { %331 = dma.done.wait [#allocation7], 128  }
 0x350   :  { %332 = vsyncadd [#allocation7], 4294967168 }
 0x351   :  { %235 = vsyncpa [#allocation6], 1 }
 0x352   :  { %236 = vsyncpa [#allocation7], 1 }

</bundles_post_ra>
